<compile_context>
chip_gen: v7x
topology: tpu7x:2x2x1
jax: 0.10.0
libtpu: 0.0.40
codegen_flags: <defaults>
</compile_context>

<pallas_src>
import jax
import jax.numpy as jnp
from jax.experimental import pallas as pl
from jax.experimental.pallas import tpu as pltpu

# TODO(synk): the midi_former transformer backbone itself is not re-implemented here; the kernel
# consumes its hidden_states output directly.  nn.Dropout(0.1) is identity at inference.

_HIDDEN = 256      # classifier hidden width: nn.Linear(hs, 256)
_LANE = 128
_SUBLANE = 8


def _round_up(x, m):
    return (x + m - 1) // m * m


def _vmem_capacity_bytes():
    """Physical per-core VMEM; conservative 64 MiB (v7x-class) if the query is unavailable."""
    try:
        return int(pltpu.get_tpu_info().vmem_capacity_bytes)
    except Exception:
        return 64 << 20


def _classifier_kernel(x_ref, w1_ref, b1_ref, w2_ref, b2_ref, o_ref):
    # x_ref:  [TILE_N, H]     f32 or bf16 (activation tile)
    # w1_ref: [H, 256]        bf16 (VMEM-resident)   b1_ref: [1, 256]   f32
    # w2_ref: [256, C_pad]    bf16 (VMEM-resident)   b2_ref: [1, C_pad] f32
    # o_ref:  [TILE_N, C_pad] out_dtype
    x = x_ref[...].astype(jnp.bfloat16)                     # no-op if input is already bf16
    h = jnp.dot(x, w1_ref[...], preferred_element_type=jnp.float32) + b1_ref[...]
    h = jnp.maximum(h, 0.0)                                 # ReLU in f32
    out = jnp.dot(h.astype(jnp.bfloat16), w2_ref[...],
                  preferred_element_type=jnp.float32) + b2_ref[...]
    o_ref[...] = out.astype(o_ref.dtype)


def token_classification_head(hidden_states, w1, b1, w2, b2, *, tile_n=None,
                              out_dtype=jnp.float32, return_padded=False):
    """Apply the TokenClassification classifier to hidden_states[:, 1:, :].

    hidden_states: [B, S, H] float32 or bfloat16 (output of the backbone for one layer)
    w1: [H, 256], b1: [256], w2: [256, C], b2: [C]
    returns: [B, S-1, C] (or the padded [B, S, C_pad] slab if return_padded=True)
    """
    B, S, H = hidden_states.shape
    C = w2.shape[1]
    C_pad = _round_up(max(C, 1), _LANE)

    # Flatten tokens: contiguous reshape, no HBM copy.  We classify *all* tokens (including
    # token 0, whose rows are cheap) and drop token 0 from the small output afterwards — this
    # avoids materializing a sliced copy of the large activation tensor in HBM.
    N = B * S
    x2d = hidden_states.reshape(N, H)
    x_itemsize = jnp.dtype(x2d.dtype).itemsize
    out_itemsize = jnp.dtype(out_dtype).itemsize

    # Row tile: biggest that comfortably fits VMEM wins on a memory-bound kernel.
    # 2048 on 64 MiB-VMEM parts (v7x), 4096 on 128 MiB parts (v5e/v6e).
    vmem_cap = _vmem_capacity_bytes()
    if tile_n is None:
        tile_n = 4096 if vmem_cap >= (128 << 20) else 2048
    tile_n = min(tile_n, _round_up(N, _SUBLANE))
    grid = (pl.cdiv(N, tile_n),)

    # Weights: bf16 for the MXU; biases stay f32.  Pad the class dim to 128 lanes (lane-dense
    # second matmul + unmasked output stores).
    w1b = w1.astype(jnp.bfloat16)
    w2b = jnp.zeros((_HIDDEN, C_pad), jnp.bfloat16).at[:, :C].set(w2.astype(jnp.bfloat16))
    b1_2d = b1.reshape(1, _HIDDEN).astype(jnp.float32)
    b2_2d = jnp.zeros((1, C_pad), jnp.float32).at[:, :C].set(b2.astype(jnp.float32))

    # Actual VMEM footprint -> scoped limit (never request the whole physical VMEM, esp. v7x).
    footprint = (2 * tile_n * H * x_itemsize           # double-buffered activation tile
                 + tile_n * H * 2                      # in-kernel bf16 cast temp
                 + tile_n * _HIDDEN * (4 + 2)          # f32 hidden + its bf16 cast
                 + 2 * tile_n * C_pad * out_itemsize   # double-buffered output tile
                 + w1b.size * 2 + w2b.size * 2         # single-buffered bf16 weights
                 + (b1_2d.size + b2_2d.size) * 4)      # f32 biases
    vmem_ceiling = (48 << 20) if vmem_cap <= (64 << 20) else (96 << 20)
    vmem_limit = min(vmem_ceiling, max(32 << 20, int(footprint * 1.5)))

    flops = 2 * N * (H * _HIDDEN + _HIDDEN * C_pad)
    bytes_accessed = (N * H * x_itemsize               # activation read
                      + N * C_pad * out_itemsize       # output write
                      + w1b.size * 2 + w2b.size * 2    # bf16 weights
                      + b1_2d.size * 4 + b2_2d.size * 4)

    def _const_spec(shape, single_buffered):
        idx = lambda i: (0,) * len(shape)
        if single_buffered:
            return pl.BlockSpec(shape, idx, pipeline_mode=pl.Buffered(1))
        return pl.BlockSpec(shape, idx)

    def _make_call(single_buffered_consts):
        return pl.pallas_call(
            _classifier_kernel,
            out_shape=jax.ShapeDtypeStruct((N, C_pad), out_dtype),
            grid=grid,
            in_specs=[
                pl.BlockSpec((tile_n, H), lambda i: (i, 0)),                   # activations
                _const_spec((H, _HIDDEN), single_buffered_consts),             # w1
                _const_spec((1, _HIDDEN), single_buffered_consts),             # b1
                _const_spec((_HIDDEN, C_pad), single_buffered_consts),         # w2 (lane-padded)
                _const_spec((1, C_pad), single_buffered_consts),               # b2 (lane-padded)
            ],
            out_specs=pl.BlockSpec((tile_n, C_pad), lambda i: (i, 0)),
            compiler_params=pltpu.CompilerParams(
                dimension_semantics=("parallel",),   # shard row tiles across TCs (v7x megacore)
                vmem_limit_bytes=vmem_limit,
            ),
            cost_estimate=pl.CostEstimate(
                flops=flops, transcendentals=0, bytes_accessed=bytes_accessed),
        )

    try:
        out_full = _make_call(True)(x2d, w1b, b1_2d, w2b, b2_2d)
    except Exception:
        # Fallback for jax versions without pipeline_mode single-buffering support.
        out_full = _make_call(False)(x2d, w1b, b1_2d, w2b, b2_2d)

    out3d = out_full.reshape(B, S, C_pad)        # contiguous reshape: free
    if return_padded:
        return out3d                             # consumer drops token 0 / pads itself: no copy
    # Drop token 0 and the lane padding on the (small) output.
    return out3d[:, 1:, :C]


def _init_linear(key, fan_in, fan_out):
    # PyTorch default nn.Linear init: U(-1/sqrt(fan_in), 1/sqrt(fan_in)) for both W and b.
    kw, kb = jax.random.split(key)
    bound = 1.0 / jnp.sqrt(float(fan_in))
    w = jax.random.uniform(kw, (fan_in, fan_out), jnp.float32, -bound, bound)
    b = jax.random.uniform(kb, (fan_out,), jnp.float32, -bound, bound)
    return w, b


if __name__ == "__main__":
    key = jax.random.PRNGKey(0)
    k_hidden, k_l1, k_l2 = jax.random.split(key, 3)

    # Small shapes consistent with the module's forward:
    B, S, HS = 2, 8, 32          # batch, sequence length, hidden size (hs)
    CLASS_NUM = 10

    # Stand-in for midi_former(...).hidden_states[layer]
    hidden_states = jax.random.normal(k_hidden, (B, S, HS), jnp.float32)

    w1, b1 = _init_linear(k_l1, HS, _HIDDEN)
    w2, b2 = _init_linear(k_l2, _HIDDEN, CLASS_NUM)

    out = token_classification_head(hidden_states, w1, b1, w2, b2)
    out = jax.block_until_ready(out)
    assert out.shape == (B, S - 1, CLASS_NUM)

    # References.
    y = hidden_states[:, 1:, :]

    # (a) bf16-matched reference (same casts as the kernel) — tight tolerance.
    h_ref = jnp.maximum(
        jnp.dot(y.astype(jnp.bfloat16).reshape(-1, HS), w1.astype(jnp.bfloat16),
                preferred_element_type=jnp.float32) + b1, 0.0)
    ref_bf16 = (jnp.dot(h_ref.astype(jnp.bfloat16), w2.astype(jnp.bfloat16),
                        preferred_element_type=jnp.float32) + b2).reshape(B, S - 1, CLASS_NUM)
    assert jnp.allclose(out, ref_bf16, atol=1e-3, rtol=1e-3)

    # (b) full-f32 reference — loose tolerance accounts for bf16 MXU inputs.
    ref_f32 = jnp.maximum(y @ w1 + b1, 0.0) @ w2 + b2
    assert jnp.allclose(out, ref_f32, atol=2e-2, rtol=2e-2)

    print("KERNEL_OK")
</pallas_src>

<mosaic_0001>
module attributes {stable_mosaic.version = 11 : i64} {
  func.func @_classifier_kernel(%arg0: i32, %arg1: memref<16x32xf32, #tpu.memory_space<vmem>>, %arg2: memref<32x256xbf16, #tpu.memory_space<vmem>>, %arg3: memref<1x256xf32, #tpu.memory_space<vmem>>, %arg4: memref<256x128xbf16, #tpu.memory_space<vmem>>, %arg5: memref<1x128xf32, #tpu.memory_space<vmem>>, %arg6: memref<16x128xf32, #tpu.memory_space<vmem>>) attributes {dimension_semantics = [#tpu.dimension_semantics<parallel>], iteration_bounds = array<i64: 1>, scalar_prefetch = 0 : i64, scratch_operands = 0 : i64, tpu.core_type = #tpu.core_type<tc>, window_params = [{transform_indices = @transform_0, window_bounds = array<i64: 16, 32>}, {pipeline_mode = #tpu.pipeline_mode<synchronous>, transform_indices = @transform_1, window_bounds = array<i64: 32, 256>}, {pipeline_mode = #tpu.pipeline_mode<synchronous>, transform_indices = @transform_2, window_bounds = array<i64: 1, 256>}, {pipeline_mode = #tpu.pipeline_mode<synchronous>, transform_indices = @transform_3, window_bounds = array<i64: 256, 128>}, {pipeline_mode = #tpu.pipeline_mode<synchronous>, transform_indices = @transform_4, window_bounds = array<i64: 1, 128>}, {transform_indices = @transform_5, window_bounds = array<i64: 16, 128>}]} {
    %c0 = arith.constant 0 : index
    %c0_0 = arith.constant 0 : index
    %0 = vector.load %arg1[%c0, %c0_0] : memref<16x32xf32, #tpu.memory_space<vmem>>, vector<16x32xf32>
    %1 = arith.truncf %0 : vector<16x32xf32> to vector<16x32xbf16>
    %c0_1 = arith.constant 0 : index
    %c0_2 = arith.constant 0 : index
    %2 = vector.load %arg2[%c0_1, %c0_2] : memref<32x256xbf16, #tpu.memory_space<vmem>>, vector<32x256xbf16>
    %cst = arith.constant dense<0.000000e+00> : vector<16x256xf32>
    %3 = tpu.matmul %1, %2, %cst {dimension_numbers = #tpu.dot_dimension_numbers<[1], [0], [0], [1], [0, 0, 1, 1], [], []>} : vector<16x32xbf16>, vector<32x256xbf16>, vector<16x256xf32> -> vector<16x256xf32>
    %c0_3 = arith.constant 0 : index
    %c0_4 = arith.constant 0 : index
    %4 = vector.load %arg3[%c0_3, %c0_4] : memref<1x256xf32, #tpu.memory_space<vmem>>, vector<1x256xf32>
    %5 = vector.broadcast %4 : vector<1x256xf32> to vector<16x256xf32>
    %6 = arith.addf %3, %5 : vector<16x256xf32>
    %cst_5 = arith.constant 0.000000e+00 : f32
    %7 = vector.broadcast %cst_5 : f32 to vector<16x256xf32>
    %8 = arith.maximumf %6, %7 : vector<16x256xf32>
    %9 = arith.truncf %8 : vector<16x256xf32> to vector<16x256xbf16>
    %c0_6 = arith.constant 0 : index
    %c0_7 = arith.constant 0 : index
    %10 = vector.load %arg4[%c0_6, %c0_7] : memref<256x128xbf16, #tpu.memory_space<vmem>>, vector<256x128xbf16>
    %cst_8 = arith.constant dense<0.000000e+00> : vector<16x128xf32>
    %11 = tpu.matmul %9, %10, %cst_8 {dimension_numbers = #tpu.dot_dimension_numbers<[1], [0], [0], [1], [0, 0, 1, 1], [], []>} : vector<16x256xbf16>, vector<256x128xbf16>, vector<16x128xf32> -> vector<16x128xf32>
    %c0_9 = arith.constant 0 : index
    %c0_10 = arith.constant 0 : index
    %12 = vector.load %arg5[%c0_9, %c0_10] : memref<1x128xf32, #tpu.memory_space<vmem>>, vector<1x128xf32>
    %13 = vector.broadcast %12 : vector<1x128xf32> to vector<16x128xf32>
    %14 = arith.addf %11, %13 : vector<16x128xf32>
    %c0_11 = arith.constant 0 : index
    %c0_12 = arith.constant 0 : index
    %15 = vector.load %arg6[%c0_11, %c0_12] : memref<16x128xf32, #tpu.memory_space<vmem>>, vector<16x128xf32>
    tpu.vector_store %arg6[%c0_11, %c0_12], %14 {strides = array<i32>} : memref<16x128xf32, #tpu.memory_space<vmem>>, vector<16x128xf32>,
    return
  }
  func.func @transform_0(%arg0: i32) -> (i32, i32) {
    %c0_i32 = arith.constant 0 : i32
    %c0_i32_0 = arith.constant 0 : i32
    return %arg0, %c0_i32 : i32, i32
  }
  func.func @transform_1(%arg0: i32) -> (i32, i32) {
    %c0_i32 = arith.constant 0 : i32
    %c0_i32_0 = arith.constant 0 : i32
    %c0_i32_1 = arith.constant 0 : i32
    return %c0_i32, %c0_i32_0 : i32, i32
  }
  func.func @transform_2(%arg0: i32) -> (i32, i32) {
    %c0_i32 = arith.constant 0 : i32
    %c0_i32_0 = arith.constant 0 : i32
    %c0_i32_1 = arith.constant 0 : i32
    return %c0_i32, %c0_i32_0 : i32, i32
  }
  func.func @transform_3(%arg0: i32) -> (i32, i32) {
    %c0_i32 = arith.constant 0 : i32
    %c0_i32_0 = arith.constant 0 : i32
    %c0_i32_1 = arith.constant 0 : i32
    return %c0_i32, %c0_i32_0 : i32, i32
  }
  func.func @transform_4(%arg0: i32) -> (i32, i32) {
    %c0_i32 = arith.constant 0 : i32
    %c0_i32_0 = arith.constant 0 : i32
    %c0_i32_1 = arith.constant 0 : i32
    return %c0_i32, %c0_i32_0 : i32, i32
  }
  func.func @transform_5(%arg0: i32) -> (i32, i32) {
    %c0_i32 = arith.constant 0 : i32
    %c0_i32_0 = arith.constant 0 : i32
    return %arg0, %c0_i32 : i32, i32
  }
}

module attributes {stable_mosaic.version = 11 : i64} {
  func.func @_classifier_kernel(%arg0: i32, %arg1: memref<16x32xf32, #tpu.memory_space<vmem>>, %arg2: memref<32x256xbf16, #tpu.memory_space<vmem>>, %arg3: memref<1x256xf32, #tpu.memory_space<vmem>>, %arg4: memref<256x128xbf16, #tpu.memory_space<vmem>>, %arg5: memref<1x128xf32, #tpu.memory_space<vmem>>, %arg6: memref<16x128xf32, #tpu.memory_space<vmem>>) attributes {dimension_semantics = [#tpu.dimension_semantics<parallel>], iteration_bounds = array<i64: 1>, scalar_prefetch = 0 : i64, scratch_operands = 0 : i64, tpu.core_type = #tpu.core_type<tc>, window_params = [{transform_indices = @transform_0, window_bounds = array<i64: 16, 32>}, {pipeline_mode = #tpu.pipeline_mode<synchronous>, transform_indices = @transform_1, window_bounds = array<i64: 32, 256>}, {pipeline_mode = #tpu.pipeline_mode<synchronous>, transform_indices = @transform_2, window_bounds = array<i64: 1, 256>}, {pipeline_mode = #tpu.pipeline_mode<synchronous>, transform_indices = @transform_3, window_bounds = array<i64: 256, 128>}, {pipeline_mode = #tpu.pipeline_mode<synchronous>, transform_indices = @transform_4, window_bounds = array<i64: 1, 128>}, {transform_indices = @transform_5, window_bounds = array<i64: 16, 128>}]} {
    %c0 = arith.constant 0 : index
    %c0_0 = arith.constant 0 : index
    %0 = vector.load %arg1[%c0, %c0_0] : memref<16x32xf32, #tpu.memory_space<vmem>>, vector<16x32xf32>
    %1 = arith.truncf %0 : vector<16x32xf32> to vector<16x32xbf16>
    %c0_1 = arith.constant 0 : index
    %c0_2 = arith.constant 0 : index
    %2 = vector.load %arg2[%c0_1, %c0_2] : memref<32x256xbf16, #tpu.memory_space<vmem>>, vector<32x256xbf16>
    %cst = arith.constant dense<0.000000e+00> : vector<16x256xf32>
    %3 = tpu.matmul %1, %2, %cst {dimension_numbers = #tpu.dot_dimension_numbers<[1], [0], [0], [1], [0, 0, 1, 1], [], []>} : vector<16x32xbf16>, vector<32x256xbf16>, vector<16x256xf32> -> vector<16x256xf32>
    %c0_3 = arith.constant 0 : index
    %c0_4 = arith.constant 0 : index
    %4 = vector.load %arg3[%c0_3, %c0_4] : memref<1x256xf32, #tpu.memory_space<vmem>>, vector<1x256xf32>
    %5 = vector.broadcast %4 : vector<1x256xf32> to vector<16x256xf32>
    %6 = arith.addf %3, %5 : vector<16x256xf32>
    %cst_5 = arith.constant 0.000000e+00 : f32
    %7 = vector.broadcast %cst_5 : f32 to vector<16x256xf32>
    %8 = arith.maximumf %6, %7 : vector<16x256xf32>
    %9 = arith.truncf %8 : vector<16x256xf32> to vector<16x256xbf16>
    %c0_6 = arith.constant 0 : index
    %c0_7 = arith.constant 0 : index
    %10 = vector.load %arg4[%c0_6, %c0_7] : memref<256x128xbf16, #tpu.memory_space<vmem>>, vector<256x128xbf16>
    %cst_8 = arith.constant dense<0.000000e+00> : vector<16x128xf32>
    %11 = tpu.matmul %9, %10, %cst_8 {dimension_numbers = #tpu.dot_dimension_numbers<[1], [0], [0], [1], [0, 0, 1, 1], [], []>} : vector<16x256xbf16>, vector<256x128xbf16>, vector<16x128xf32> -> vector<16x128xf32>
    %c0_9 = arith.constant 0 : index
    %c0_10 = arith.constant 0 : index
    %12 = vector.load %arg5[%c0_9, %c0_10] : memref<1x128xf32, #tpu.memory_space<vmem>>, vector<1x128xf32>
    %13 = vector.broadcast %12 : vector<1x128xf32> to vector<16x128xf32>
    %14 = arith.addf %11, %13 : vector<16x128xf32>
    %c0_11 = arith.constant 0 : index
    %c0_12 = arith.constant 0 : index
    %15 = vector.load %arg6[%c0_11, %c0_12] : memref<16x128xf32, #tpu.memory_space<vmem>>, vector<16x128xf32>
    tpu.vector_store %arg6[%c0_11, %c0_12], %14 {strides = array<i32>} : memref<16x128xf32, #tpu.memory_space<vmem>>, vector<16x128xf32>,
    return
  }
  func.func @transform_0(%arg0: i32) -> (i32, i32) {
    %c0_i32 = arith.constant 0 : i32
    %c0_i32_0 = arith.constant 0 : i32
    return %arg0, %c0_i32 : i32, i32
  }
  func.func @transform_1(%arg0: i32) -> (i32, i32) {
    %c0_i32 = arith.constant 0 : i32
    %c0_i32_0 = arith.constant 0 : i32
    %c0_i32_1 = arith.constant 0 : i32
    return %c0_i32, %c0_i32_0 : i32, i32
  }
  func.func @transform_2(%arg0: i32) -> (i32, i32) {
    %c0_i32 = arith.constant 0 : i32
    %c0_i32_0 = arith.constant 0 : i32
    %c0_i32_1 = arith.constant 0 : i32
    return %c0_i32, %c0_i32_0 : i32, i32
  }
  func.func @transform_3(%arg0: i32) -> (i32, i32) {
    %c0_i32 = arith.constant 0 : i32
    %c0_i32_0 = arith.constant 0 : i32
    %c0_i32_1 = arith.constant 0 : i32
    return %c0_i32, %c0_i32_0 : i32, i32
  }
  func.func @transform_4(%arg0: i32) -> (i32, i32) {
    %c0_i32 = arith.constant 0 : i32
    %c0_i32_0 = arith.constant 0 : i32
    %c0_i32_1 = arith.constant 0 : i32
    return %c0_i32, %c0_i32_0 : i32, i32
  }
  func.func @transform_5(%arg0: i32) -> (i32, i32) {
    %c0_i32 = arith.constant 0 : i32
    %c0_i32_0 = arith.constant 0 : i32
    return %arg0, %c0_i32 : i32, i32
  }
}

</mosaic_0001>

<bundles_post_ra>
// kernel: tpu_custom_call.1
= control target key start
LH: loop header
LB: loop body
LE: loop exit
PB: predicated region body
PF: predicated region fallthrough
CT: control target
= control target key end

     0   :  { %10 = vsyncpa [#allocation3], 0  ;;  %s629_s0 = inlined_call_operand.hbm [shape: f32[16,32], index: 0, kind: input, shape index: {}]   ;;  %s630_s1 = inlined_call_operand.hbm [shape: bf16[32,256], index: 1, kind: input, shape index: {}]   ;;  %s631_s2 = inlined_call_operand.vmem [shape: f32[1,256], index: 2, kind: input, shape index: {}]   ;;  %s632_s3 = inlined_call_operand.hbm [shape: bf16[256,128], index: 3, kind: input, shape index: {}]   ;;  %s633_s4 = inlined_call_operand.vmem [shape: f32[1,128], index: 4, kind: input, shape index: {}]   ;;  %s634_s5 = inlined_call_operand.hbm [shape: f32[16,128], index: 5, kind: output, shape index: {}]  }
   0x1   :  { %11 = vsyncpa [#allocation6], 0 }
   0x2   :  { %12 = vsyncpa [#allocation4], 0  ;;  %s520_s18 = smov [#allocation5]   ;;  %s521_s20 = smov [#allocation2]  }
   0x3   :  { %s30_s19 = sshll.u32 %s520_s18, 4  ;;  %s18_s21 = sshll.u32 %s521_s20, 4  ;;  %s31_s19 = int_to_ptr.vmem [resolvable:$true] %s30_s19  ;;  %s559_s21 = int_to_ptr.vmem [resolvable:$true] %s18_s21 }
   0x4   :  { %s426_s24 = scalar_lea.hbm %s630_s1, 512 }
   0x5   :  { %p427_p0 = scmp.ne.s32.totalorder %s630_s1, %s426_s24  ;;  %p430_p1 = scmp.lt.u32.totalorder %s426_s24, %s630_s1 }
   0x7   :  { %p432_p2 = pnand %p430_p1, %p427_p0 }
   0x9   :  { %435 = shalt.err (!%p432_p2)
}
   0xa   :  { %s436_s29 = scalar_lea.vmem %s31_s19, 512  ;;  %p441_p4 = scmp.lt.s32.totalorder %s31_s19, %s31_s19 }
   0xb   :  { %p437_p3 = scmp.ne.s32.totalorder %s31_s19, %s436_s29  ;;  %p442_p5 = scmp.lt.s32.totalorder %s436_s29, %s436_s29 }
   0xd   :  { %p443_p6 = por %p442_p5, %p441_p4 }
   0xf   :  { %p444_p7 = pnand %p443_p6, %p437_p3 }
  0x11   :  { %447 = shalt.err (!%p444_p7)
}
  0x12   :  { %s522_s30 = smov 128   ;;  %s523_s6 = smov 8  }
  0x13   :  { %36 = dma.hbm_to_vmem [thread:$0]  %s630_s1, 512, %s31_s19, [#allocation6], %s522_s30, %s522_s30, %s523_s6  }
  0x14   :  { %s448_s11 = scalar_lea.hbm %s629_s0, 256 }
  0x15   :  { %p449_p8 = scmp.ne.s32.totalorder %s629_s0, %s448_s11  ;;  %p452_p9 = scmp.lt.u32.totalorder %s448_s11, %s629_s0 }
  0x17   :  { %p454_p10 = pnand %p452_p9, %p449_p8 }
  0x19   :  { %457 = shalt.err (!%p454_p10)
}
  0x1a   :  { %s458_s16 = scalar_lea.vmem %s559_s21, 256  ;;  %p463_p12 = scmp.lt.s32.totalorder %s559_s21, %s559_s21 }
  0x1b   :  { %p459_p11 = scmp.ne.s32.totalorder %s559_s21, %s458_s16  ;;  %p464_p13 = scmp.lt.s32.totalorder %s458_s16, %s458_s16 }
  0x1d   :  { %p465_p0 = por %p464_p13, %p463_p12 }
  0x1f   :  { %p466_p1 = pnand %p465_p0, %p459_p11 }
  0x21   :  { %469 = shalt.err (!%p466_p1)
}
  0x22   :  { %24 = dma.hbm_to_vmem [thread:$0]  %s629_s0, 256, %s559_s21, [#allocation3], %s522_s30, %s522_s30, %s523_s6  }
  0x23   :  { %s524_s18 = smov [#allocation7]   ;;  %s470_s23 = scalar_lea.hbm %s632_s3, 2048 }
  0x24   :  { %s44_s19 = sshll.u32 %s524_s18, 4  ;;  %p471_p2 = scmp.ne.s32.totalorder %s632_s3, %s470_s23  ;;  %s45_s19 = int_to_ptr.vmem [resolvable:$true] %s44_s19 }
  0x25   :  { %p474_p3 = scmp.lt.u32.totalorder %s470_s23, %s632_s3 }
  0x27   :  { %p476_p4 = pnand %p474_p3, %p471_p2 }
  0x29   :  { %479 = shalt.err (!%p476_p4)
}
  0x2a   :  { %s480_s28 = scalar_lea.vmem %s45_s19, 2048  ;;  %p485_p6 = scmp.lt.s32.totalorder %s45_s19, %s45_s19 }
  0x2b   :  { %p481_p5 = scmp.ne.s32.totalorder %s45_s19, %s480_s28  ;;  %p486_p7 = scmp.lt.s32.totalorder %s480_s28, %s480_s28 }
  0x2d   :  { %p487_p8 = por %p486_p7, %p485_p6 }
  0x2f   :  { %p488_p9 = pnand %p487_p8, %p481_p5 }
  0x31   :  { %491 = shalt.err (!%p488_p9)
}
  0x32   :  { %s525_s0 = smov 64   ;;  %s526_s21 = smov 4  }
  0x33   :  { %50 = dma.hbm_to_vmem [thread:$0]  %s632_s3, 2048, %s45_s19, [#allocation6], %s525_s0, %s525_s0, %s526_s21  }
  0x34   :  { %514 = dma.done.wait [#allocation3], 256  }
  0x35   :  { %515 = vsyncadd [#allocation3], 4294967040 }
  0x36   :  { %516 = dma.done.wait [#allocation6], 2560  }
  0x37   :  { %517 = vsyncadd [#allocation6], 4294964736  ;;  %v527_v0 = vmov 0   ;;  %v404_v1 = vld [vmem:[#allocation5 + $0x4] ss:$8 sps:$4 sm:$0xff]   ;;  %v63_v5 = vld [vmem:[#allocation2] sm:$0xff]  ;;  %v72_v24 = vlaneseq }
  0x38   :  { %138 = vmatprep.mubr.bf16.mxu0 %v527_v0  ;;  %v406_v2 = vld [vmem:[#allocation5] ss:$8 sps:$4 sm:$0xff]   ;;  %106 = vmatprep.subr.bf16.mxu0 %v404_v1  ;;  %v407_v3 = vld [vmem:[#allocation5 + $0x14] ss:$8 sps:$4 sm:$0xff]   ;;  %v409_v4 = vld [vmem:[#allocation5 + $0x10] ss:$8 sps:$4 sm:$0xff]  }
  0x39   :  { %107 = vmatpush1.bf16.msra.mxu0 %v406_v2  ;;  %v64_v6 = vld [vmem:[#allocation2 + $0x8] sm:$0xff]  ;;  %v410_v7 = vld [vmem:[#allocation7 + $0x40] sm:$0xff]   ;;  %v412_v10 = vld [vmem:[#allocation7 + $0x48] sm:$0xff]   ;;  %vm102_vm0 = vcmask 261120   ;;  %v73_v25 = vshrl.u32 %v72_v24, 7  ;;  %s528_s10 = smov [#allocation8]  }
  0x3a   :  { %108 = vmatprep.subr.bf16.mxu0 %v407_v3  ;;  %v411_v8 = vld [vmem:[#allocation7] sm:$0xff]   ;;  %v65_v9 = vpack.c.bf16 %v64_v6, %v63_v5  ;;  %373 = vmatprep.subr.bf16.mxu1 %v410_v7  ;;  %v413_v11 = vld [vmem:[#allocation7 + $0x8] sm:$0xff]   ;;  %v414_v12 = vld [vmem:[#allocation7 + $0x50] sm:$0xff]   ;;  %s338_s11 = sshll.u32 %s528_s10, 4  ;;  %s339_s11 = int_to_ptr.vmem [resolvable:$true] %s338_s11 }
  0x3b   :  { %374 = vmatpush3.bf16.msra.mxu1 %v411_v8  ;;  %v415_v13 = vld [vmem:[#allocation7 + $0x10] sm:$0xff]   ;;  %v416_v14 = vld [vmem:[#allocation7 + $0x58] sm:$0xff]   ;;  %v418_v16 = vld [vmem:[#allocation7 + $0x60] sm:$0xff]   ;;  %v74_v26 = vsub.s32 0, %v73_v25  ;;  %v78_v28 = vsub.s32 1, %v73_v25  ;;  %s492_s12 = scalar_lea.vmem %s339_s11, 256  ;;  %p497_p11 = scmp.lt.s32.totalorder %s339_s11, %s339_s11 }
  0x3c   :  { %375 = vmatprep.subr.bf16.mxu1 %v412_v10  ;;  %v417_v15 = vld [vmem:[#allocation7 + $0x18] sm:$0xff]   ;;  %v419_v17 = vld [vmem:[#allocation7 + $0x20] sm:$0xff]   ;;  %v420_v18 = vld [vmem:[#allocation7 + $0x68] sm:$0xff]   ;;  %p493_p10 = scmp.ne.s32.totalorder %s339_s11, %s492_s12  ;;  %p498_p12 = scmp.lt.s32.totalorder %s492_s12, %s492_s12 }
  0x3d   :  { %109 = vmatpush1.bf16.msra.mxu0 %v409_v4  ;;  %v421_v19 = vld [vmem:[#allocation7 + $0x28] sm:$0xff]   ;;  %v422_v20 = vld [vmem:[#allocation7 + $0x70] sm:$0xff]   ;;  %v424_v22 = vld [vmem:[#allocation7 + $0x78] sm:$0xff]  }
  0x3e   :  { %v423_v21 = vld [vmem:[#allocation7 + $0x30] sm:$0xff]   ;;  %v425_v23 = vld [vmem:[#allocation7 + $0x38] sm:$0xff]   ;;  %p499_p13 = por %p498_p12, %p497_p11 }
  0x3f   :  { %376 = vmatpush3.bf16.msra.mxu1 %v413_v11  ;;  %v70_v27 = vld [vmem:[%s631_s2] sm:$0x3] }
  0x40   :  { %355 = vmatmul.mubr.msk.bf16.vlgmr.msra.gmra.mrb[0].mxu0 %vm102_vm0, %v65_v9  ;;  %377 = vmatprep.subr.bf16.mxu1 %v414_v12  ;;  %v75_v29 = vrot.slane %v70_v27, %v74_v26  ;;  %v79_v30 = vrot.slane %v70_v27, %v78_v28  ;;  %v356_v46 = vld [vmem:[%s633_s4] ss:$0 sm:$0xff]  ;;  %p500_p0 = pnand %p499_p13, %p493_p10 }
  0x43   :  { %378 = vmatpush3.bf16.msra.mxu1 %v415_v13 }
  0x44   :  { %379 = vmatprep.subr.bf16.mxu1 %v416_v14 }
  0x47   :  { %380 = vmatpush3.bf16.msra.mxu1 %v417_v15 }
  0x48   :  { %381 = vmatprep.subr.bf16.mxu1 %v418_v16 }
  0x4b   :  { %382 = vmatpush3.bf16.msra.mxu1 %v419_v17 }
  0x4c   :  { %383 = vmatprep.subr.bf16.mxu1 %v420_v18 }
  0x4f   :  { %384 = vmatpush3.bf16.msra.mxu1 %v421_v19 }
  0x50   :  { %385 = vmatprep.subr.bf16.mxu1 %v422_v20 }
  0x53   :  { %386 = vmatpush3.bf16.msra.mxu1 %v423_v21 }
  0x54   :  { %387 = vmatprep.subr.bf16.mxu1 %v424_v22 }
  0x57   :  { %388 = vmatpush3.bf16.msra.mxu1 %v425_v23 }
 0x113   :  { %v140_v31 = vpop.f32.mrb[0].mxu0 }
 0x114   :  { %v141_v32 = vadd.f32 %v140_v31, %v75_v29  ;;  %v142_v33 = vpop.f32.mrb[1].mxu0 }
 0x115   :  { %v143_v34 = vadd.f32 %v142_v33, %v79_v30  ;;  %v144_v35 = vpop.f32.mrb[2].mxu0 }
 0x116   :  { %v145_v36 = vadd.f32 %v144_v35, %v75_v29  ;;  %v146_v37 = vpop.f32.mrb[3].mxu0  ;;  %v149_v39 = vmax.f32 %v141_v32, 0.0 }
 0x117   :  { %v147_v38 = vadd.f32 %v146_v37, %v79_v30  ;;  %v150_v41 = vmax.f32 %v143_v34, 0.0 }
 0x118   :  { %v151_v40 = vmax.f32 %v145_v36, 0.0 }
 0x119   :  { %v152_v42 = vmax.f32 %v147_v38, 0.0 }
 0x11a   :  { %v153_v43 = vpack.c.bf16 %v151_v40, %v149_v39 }
 0x11b   :  { %v154_v44 = vpack.c.bf16 %v152_v42, %v150_v41 }
 0x11d   :  { %322 = vmatprep.mubr.bf16.mxu1 %v154_v44 }
 0x11e   :  { %323 = vmatmul.mubr.bf16.vlgmr.msra.gmra.mrb[0].mxu1 %v153_v43 }
 0x1f1   :  { %v389_v45 = vpop.f32.mrb[0].mxu1 }
 0x1f2   :  { %v390_v47 = vpop.f32.mrb[1].mxu1 }
 0x1f3   :  { %v391_v48 = vadd.f32 %v390_v47, %v389_v45  ;;  %v392_v49 = vpop.f32.mrb[2].mxu1 }
 0x1f4   :  { %v393_v50 = vpop.f32.mrb[3].mxu1 }
 0x1f5   :  { %v325_v51 = vadd.f32 %v391_v48, %v356_v46  ;;  %v394_v52 = vadd.f32 %v393_v50, %v392_v49 }
 0x1f7   :  { %331 = vst [vmem:[#allocation8] sm:$0xff] %v325_v51  ;;  %v328_v53 = vadd.f32 %v394_v52, %v356_v46 }
 0x1f9   :  { %332 = vst [vmem:[#allocation8 + $0x8] sm:$0xff] %v328_v53 }
 0x1fa   :  { %503 = shalt.err (!%p500_p0)
}
 0x1fb   :  { %s504_s14 = scalar_lea.hbm %s634_s5, 256 }
 0x1fc   :  { %p505_p1 = scmp.ne.s32.totalorder %s634_s5, %s504_s14  ;;  %p508_p2 = scmp.lt.u32.totalorder %s504_s14, %s634_s5 }
 0x1fe   :  { %p510_p3 = pnand %p508_p2, %p505_p1 }
 0x200   :  { %513 = shalt.err (!%p510_p3)
}
 0x201   :  { %344 = dma.vmem_to_hbm [thread:$0]  %s339_s11, 256, %s634_s5, [#allocation4], %s522_s30, %s522_s30, %s523_s6  }
 0x202   :  { %518 = dma.done.wait [#allocation4], 256  }
 0x203   :  { %519 = vsyncadd [#allocation4], 4294967040 }
 0x204   :  { %348 = vsyncpa [#allocation3], 1 }
 0x205   :  { %349 = vsyncpa [#allocation6], 1 }
 0x206   :  { %350 = vsyncpa [#allocation4], 1 }

// kernel: tpu_custom_call.1
= control target key start
LH: loop header
LB: loop body
LE: loop exit
PB: predicated region body
PF: predicated region fallthrough
CT: control target
= control target key end

     0   :  { %10 = vsyncpa [#allocation3], 0  ;;  %s629_s0 = inlined_call_operand.hbm [shape: f32[16,32], index: 0, kind: input, shape index: {}]   ;;  %s630_s1 = inlined_call_operand.hbm [shape: bf16[32,256], index: 1, kind: input, shape index: {}]   ;;  %s631_s2 = inlined_call_operand.vmem [shape: f32[1,256], index: 2, kind: input, shape index: {}]   ;;  %s632_s3 = inlined_call_operand.hbm [shape: bf16[256,128], index: 3, kind: input, shape index: {}]   ;;  %s633_s4 = inlined_call_operand.vmem [shape: f32[1,128], index: 4, kind: input, shape index: {}]   ;;  %s634_s5 = inlined_call_operand.hbm [shape: f32[16,128], index: 5, kind: output, shape index: {}]  }
   0x1   :  { %11 = vsyncpa [#allocation6], 0 }
   0x2   :  { %12 = vsyncpa [#allocation4], 0  ;;  %s520_s18 = smov [#allocation5]   ;;  %s521_s20 = smov [#allocation2]  }
   0x3   :  { %s30_s19 = sshll.u32 %s520_s18, 4  ;;  %s18_s21 = sshll.u32 %s521_s20, 4  ;;  %s31_s19 = int_to_ptr.vmem [resolvable:$true] %s30_s19  ;;  %s559_s21 = int_to_ptr.vmem [resolvable:$true] %s18_s21 }
   0x4   :  { %s426_s24 = scalar_lea.hbm %s630_s1, 512 }
   0x5   :  { %p427_p0 = scmp.ne.s32.totalorder %s630_s1, %s426_s24  ;;  %p430_p1 = scmp.lt.u32.totalorder %s426_s24, %s630_s1 }
   0x7   :  { %p432_p2 = pnand %p430_p1, %p427_p0 }
   0x9   :  { %435 = shalt.err (!%p432_p2)
}
   0xa   :  { %s436_s29 = scalar_lea.vmem %s31_s19, 512  ;;  %p441_p4 = scmp.lt.s32.totalorder %s31_s19, %s31_s19 }
   0xb   :  { %p437_p3 = scmp.ne.s32.totalorder %s31_s19, %s436_s29  ;;  %p442_p5 = scmp.lt.s32.totalorder %s436_s29, %s436_s29 }
   0xd   :  { %p443_p6 = por %p442_p5, %p441_p4 }
   0xf   :  { %p444_p7 = pnand %p443_p6, %p437_p3 }
  0x11   :  { %447 = shalt.err (!%p444_p7)
}
  0x12   :  { %s522_s30 = smov 128   ;;  %s523_s6 = smov 8  }
  0x13   :  { %36 = dma.hbm_to_vmem [thread:$0]  %s630_s1, 512, %s31_s19, [#allocation6], %s522_s30, %s522_s30, %s523_s6  }
  0x14   :  { %s448_s11 = scalar_lea.hbm %s629_s0, 256 }
  0x15   :  { %p449_p8 = scmp.ne.s32.totalorder %s629_s0, %s448_s11  ;;  %p452_p9 = scmp.lt.u32.totalorder %s448_s11, %s629_s0 }
  0x17   :  { %p454_p10 = pnand %p452_p9, %p449_p8 }
  0x19   :  { %457 = shalt.err (!%p454_p10)
}
  0x1a   :  { %s458_s16 = scalar_lea.vmem %s559_s21, 256  ;;  %p463_p12 = scmp.lt.s32.totalorder %s559_s21, %s559_s21 }
  0x1b   :  { %p459_p11 = scmp.ne.s32.totalorder %s559_s21, %s458_s16  ;;  %p464_p13 = scmp.lt.s32.totalorder %s458_s16, %s458_s16 }
  0x1d   :  { %p465_p0 = por %p464_p13, %p463_p12 }
  0x1f   :  { %p466_p1 = pnand %p465_p0, %p459_p11 }
  0x21   :  { %469 = shalt.err (!%p466_p1)
}
  0x22   :  { %24 = dma.hbm_to_vmem [thread:$0]  %s629_s0, 256, %s559_s21, [#allocation3], %s522_s30, %s522_s30, %s523_s6  }
  0x23   :  { %s524_s18 = smov [#allocation7]   ;;  %s470_s23 = scalar_lea.hbm %s632_s3, 2048 }
  0x24   :  { %s44_s19 = sshll.u32 %s524_s18, 4  ;;  %p471_p2 = scmp.ne.s32.totalorder %s632_s3, %s470_s23  ;;  %s45_s19 = int_to_ptr.vmem [resolvable:$true] %s44_s19 }
  0x25   :  { %p474_p3 = scmp.lt.u32.totalorder %s470_s23, %s632_s3 }
  0x27   :  { %p476_p4 = pnand %p474_p3, %p471_p2 }
  0x29   :  { %479 = shalt.err (!%p476_p4)
}
  0x2a   :  { %s480_s28 = scalar_lea.vmem %s45_s19, 2048  ;;  %p485_p6 = scmp.lt.s32.totalorder %s45_s19, %s45_s19 }
  0x2b   :  { %p481_p5 = scmp.ne.s32.totalorder %s45_s19, %s480_s28  ;;  %p486_p7 = scmp.lt.s32.totalorder %s480_s28, %s480_s28 }
  0x2d   :  { %p487_p8 = por %p486_p7, %p485_p6 }
  0x2f   :  { %p488_p9 = pnand %p487_p8, %p481_p5 }
  0x31   :  { %491 = shalt.err (!%p488_p9)
}
  0x32   :  { %s525_s0 = smov 64   ;;  %s526_s21 = smov 4  }
  0x33   :  { %50 = dma.hbm_to_vmem [thread:$0]  %s632_s3, 2048, %s45_s19, [#allocation6], %s525_s0, %s525_s0, %s526_s21  }
  0x34   :  { %514 = dma.done.wait [#allocation3], 256  }
  0x35   :  { %515 = vsyncadd [#allocation3], 4294967040 }
  0x36   :  { %516 = dma.done.wait [#allocation6], 2560  }
  0x37   :  { %517 = vsyncadd [#allocation6], 4294964736  ;;  %v527_v0 = vmov 0   ;;  %v404_v1 = vld [vmem:[#allocation5 + $0x4] ss:$8 sps:$4 sm:$0xff]   ;;  %v63_v5 = vld [vmem:[#allocation2] sm:$0xff]  ;;  %v72_v24 = vlaneseq }
  0x38   :  { %138 = vmatprep.mubr.bf16.mxu0 %v527_v0  ;;  %v406_v2 = vld [vmem:[#allocation5] ss:$8 sps:$4 sm:$0xff]   ;;  %106 = vmatprep.subr.bf16.mxu0 %v404_v1  ;;  %v407_v3 = vld [vmem:[#allocation5 + $0x14] ss:$8 sps:$4 sm:$0xff]   ;;  %v409_v4 = vld [vmem:[#allocation5 + $0x10] ss:$8 sps:$4 sm:$0xff]  }
  0x39   :  { %107 = vmatpush1.bf16.msra.mxu0 %v406_v2  ;;  %v64_v6 = vld [vmem:[#allocation2 + $0x8] sm:$0xff]  ;;  %v410_v7 = vld [vmem:[#allocation7 + $0x40] sm:$0xff]   ;;  %v412_v10 = vld [vmem:[#allocation7 + $0x48] sm:$0xff]   ;;  %vm102_vm0 = vcmask 261120   ;;  %v73_v25 = vshrl.u32 %v72_v24, 7  ;;  %s528_s10 = smov [#allocation8]  }
  0x3a   :  { %108 = vmatprep.subr.bf16.mxu0 %v407_v3  ;;  %v411_v8 = vld [vmem:[#allocation7] sm:$0xff]   ;;  %v65_v9 = vpack.c.bf16 %v64_v6, %v63_v5  ;;  %373 = vmatprep.subr.bf16.mxu1 %v410_v7  ;;  %v413_v11 = vld [vmem:[#allocation7 + $0x8] sm:$0xff]   ;;  %v414_v12 = vld [vmem:[#allocation7 + $0x50] sm:$0xff]   ;;  %s338_s11 = sshll.u32 %s528_s10, 4  ;;  %s339_s11 = int_to_ptr.vmem [resolvable:$true] %s338_s11 }
  0x3b   :  { %374 = vmatpush3.bf16.msra.mxu1 %v411_v8  ;;  %v415_v13 = vld [vmem:[#allocation7 + $0x10] sm:$0xff]   ;;  %v416_v14 = vld [vmem:[#allocation7 + $0x58] sm:$0xff]   ;;  %v418_v16 = vld [vmem:[#allocation7 + $0x60] sm:$0xff]   ;;  %v74_v26 = vsub.s32 0, %v73_v25  ;;  %v78_v28 = vsub.s32 1, %v73_v25  ;;  %s492_s12 = scalar_lea.vmem %s339_s11, 256  ;;  %p497_p11 = scmp.lt.s32.totalorder %s339_s11, %s339_s11 }
  0x3c   :  { %375 = vmatprep.subr.bf16.mxu1 %v412_v10  ;;  %v417_v15 = vld [vmem:[#allocation7 + $0x18] sm:$0xff]   ;;  %v419_v17 = vld [vmem:[#allocation7 + $0x20] sm:$0xff]   ;;  %v420_v18 = vld [vmem:[#allocation7 + $0x68] sm:$0xff]   ;;  %p493_p10 = scmp.ne.s32.totalorder %s339_s11, %s492_s12  ;;  %p498_p12 = scmp.lt.s32.totalorder %s492_s12, %s492_s12 }
  0x3d   :  { %109 = vmatpush1.bf16.msra.mxu0 %v409_v4  ;;  %v421_v19 = vld [vmem:[#allocation7 + $0x28] sm:$0xff]   ;;  %v422_v20 = vld [vmem:[#allocation7 + $0x70] sm:$0xff]   ;;  %v424_v22 = vld [vmem:[#allocation7 + $0x78] sm:$0xff]  }
  0x3e   :  { %v423_v21 = vld [vmem:[#allocation7 + $0x30] sm:$0xff]   ;;  %v425_v23 = vld [vmem:[#allocation7 + $0x38] sm:$0xff]   ;;  %p499_p13 = por %p498_p12, %p497_p11 }
  0x3f   :  { %376 = vmatpush3.bf16.msra.mxu1 %v413_v11  ;;  %v70_v27 = vld [vmem:[%s631_s2] sm:$0x3] }
  0x40   :  { %355 = vmatmul.mubr.msk.bf16.vlgmr.msra.gmra.mrb[0].mxu0 %vm102_vm0, %v65_v9  ;;  %377 = vmatprep.subr.bf16.mxu1 %v414_v12  ;;  %v75_v29 = vrot.slane %v70_v27, %v74_v26  ;;  %v79_v30 = vrot.slane %v70_v27, %v78_v28  ;;  %v356_v46 = vld [vmem:[%s633_s4] ss:$0 sm:$0xff]  ;;  %p500_p0 = pnand %p499_p13, %p493_p10 }
  0x43   :  { %378 = vmatpush3.bf16.msra.mxu1 %v415_v13 }
  0x44   :  { %379 = vmatprep.subr.bf16.mxu1 %v416_v14 }
  0x47   :  { %380 = vmatpush3.bf16.msra.mxu1 %v417_v15 }
  0x48   :  { %381 = vmatprep.subr.bf16.mxu1 %v418_v16 }
  0x4b   :  { %382 = vmatpush3.bf16.msra.mxu1 %v419_v17 }
  0x4c   :  { %383 = vmatprep.subr.bf16.mxu1 %v420_v18 }
  0x4f   :  { %384 = vmatpush3.bf16.msra.mxu1 %v421_v19 }
  0x50   :  { %385 = vmatprep.subr.bf16.mxu1 %v422_v20 }
  0x53   :  { %386 = vmatpush3.bf16.msra.mxu1 %v423_v21 }
  0x54   :  { %387 = vmatprep.subr.bf16.mxu1 %v424_v22 }
  0x57   :  { %388 = vmatpush3.bf16.msra.mxu1 %v425_v23 }
 0x113   :  { %v140_v31 = vpop.f32.mrb[0].mxu0 }
 0x114   :  { %v141_v32 = vadd.f32 %v140_v31, %v75_v29  ;;  %v142_v33 = vpop.f32.mrb[1].mxu0 }
 0x115   :  { %v143_v34 = vadd.f32 %v142_v33, %v79_v30  ;;  %v144_v35 = vpop.f32.mrb[2].mxu0 }
 0x116   :  { %v145_v36 = vadd.f32 %v144_v35, %v75_v29  ;;  %v146_v37 = vpop.f32.mrb[3].mxu0  ;;  %v149_v39 = vmax.f32 %v141_v32, 0.0 }
 0x117   :  { %v147_v38 = vadd.f32 %v146_v37, %v79_v30  ;;  %v150_v41 = vmax.f32 %v143_v34, 0.0 }
 0x118   :  { %v151_v40 = vmax.f32 %v145_v36, 0.0 }
 0x119   :  { %v152_v42 = vmax.f32 %v147_v38, 0.0 }
 0x11a   :  { %v153_v43 = vpack.c.bf16 %v151_v40, %v149_v39 }
 0x11b   :  { %v154_v44 = vpack.c.bf16 %v152_v42, %v150_v41 }
 0x11d   :  { %322 = vmatprep.mubr.bf16.mxu1 %v154_v44 }
 0x11e   :  { %323 = vmatmul.mubr.bf16.vlgmr.msra.gmra.mrb[0].mxu1 %v153_v43 }
 0x1f1   :  { %v389_v45 = vpop.f32.mrb[0].mxu1 }
 0x1f2   :  { %v390_v47 = vpop.f32.mrb[1].mxu1 }
 0x1f3   :  { %v391_v48 = vadd.f32 %v390_v47, %v389_v45  ;;  %v392_v49 = vpop.f32.mrb[2].mxu1 }
 0x1f4   :  { %v393_v50 = vpop.f32.mrb[3].mxu1 }
 0x1f5   :  { %v325_v51 = vadd.f32 %v391_v48, %v356_v46  ;;  %v394_v52 = vadd.f32 %v393_v50, %v392_v49 }
 0x1f7   :  { %331 = vst [vmem:[#allocation8] sm:$0xff] %v325_v51  ;;  %v328_v53 = vadd.f32 %v394_v52, %v356_v46 }
 0x1f9   :  { %332 = vst [vmem:[#allocation8 + $0x8] sm:$0xff] %v328_v53 }
 0x1fa   :  { %503 = shalt.err (!%p500_p0)
}
 0x1fb   :  { %s504_s14 = scalar_lea.hbm %s634_s5, 256 }
 0x1fc   :  { %p505_p1 = scmp.ne.s32.totalorder %s634_s5, %s504_s14  ;;  %p508_p2 = scmp.lt.u32.totalorder %s504_s14, %s634_s5 }
 0x1fe   :  { %p510_p3 = pnand %p508_p2, %p505_p1 }
 0x200   :  { %513 = shalt.err (!%p510_p3)
}
 0x201   :  { %344 = dma.vmem_to_hbm [thread:$0]  %s339_s11, 256, %s634_s5, [#allocation4], %s522_s30, %s522_s30, %s523_s6  }
 0x202   :  { %518 = dma.done.wait [#allocation4], 256  }
 0x203   :  { %519 = vsyncadd [#allocation4], 4294967040 }
 0x204   :  { %348 = vsyncpa [#allocation3], 1 }
 0x205   :  { %349 = vsyncpa [#allocation6], 1 }
 0x206   :  { %350 = vsyncpa [#allocation4], 1 }

</bundles_post_ra>
